<compile_context>
chip_gen: v7x
topology: tpu7x:2x2x1
jax: 0.10.0
libtpu: 0.0.40
codegen_flags: <defaults>
</compile_context>

<pallas_src>
import functools

import jax
import jax.numpy as jnp
from jax.experimental import pallas as pl
from jax.experimental.pallas import tpu as pltpu


def _round_up(x: int, m: int) -> int:
    return ((x + m - 1) // m) * m


def mlp_kernel(x_ref, w1_ref, b1_ref, w2_ref, b2_ref, o_ref):
    """One (tm, E) row tile per grid step; W1/W2/b1/b2 are fully VMEM-resident."""
    x = x_ref[...].astype(jnp.bfloat16)                       # in-kernel cast (VPU)
    hid = jnp.dot(x, w1_ref[...], preferred_element_type=jnp.float32)
    hid = hid + b1_ref[...]                                    # (tm, H) + (1, H), f32
    hid = hid * jax.nn.sigmoid(hid)                            # SiLU (EUP sigmoid)
    out = jnp.dot(hid.astype(jnp.bfloat16), w2_ref[...],
                  preferred_element_type=jnp.float32)
    o_ref[...] = (out + b2_ref[...]).astype(o_ref.dtype)


def mlp_pallas(x, w1, b1, w2, b2, *, tm=512):
    """x: (M, E); w1: (E, H) bf16; b1: (1, H); w2: (H, E) bf16; b2: (1, E). -> (M, E)."""
    M, E = x.shape
    H = w1.shape[1]
    out_dtype = x.dtype

    # Weights should already be bf16 (init-time conversion); these are no-ops then.
    w1 = w1.astype(jnp.bfloat16)
    w2 = w2.astype(jnp.bfloat16)
    b1 = b1.astype(jnp.float32).reshape(1, H)
    b2 = b2.astype(jnp.float32).reshape(1, E)

    # Row tile: multiple of 8 (sublane), clamped to M; guarantee >=2 M tiles so the
    # "parallel" axis can shard across both TensorCores on v7x.
    tm = min(tm, _round_up(M, 8))
    while pl.cdiv(M, tm) < 2 and tm > 8:
        tm = _round_up(tm // 2, 8)
    num_m_tiles = pl.cdiv(M, tm)

    x_bytes = jnp.dtype(x.dtype).itemsize
    out_bytes = jnp.dtype(out_dtype).itemsize

    # VMEM footprint estimate: double-buffered x/out blocks, resident bf16 weights
    # (assume the compiler still allocates 2 buffers each), biases, and the (tm, H)
    # hidden intermediate in f32 + a bf16 copy.  2x headroom, capped at 48 MiB so we
    # never request the whole 64 MiB physical VMEM of a v7x TensorCore.
    vmem_bytes = (
        2 * tm * E * x_bytes            # x blocks
        + 2 * E * H * 2                 # W1 (bf16)
        + 2 * H * E * 2                 # W2 (bf16)
        + 2 * (H + E) * 4               # biases
        + 2 * tm * E * out_bytes        # output blocks
        + tm * H * (4 + 2)              # hid f32 + bf16 copy
    )
    vmem_limit = min(48 * 1024 * 1024, max(2 * vmem_bytes, 16 * 1024 * 1024))

    cost = pl.CostEstimate(
        flops=4 * M * E * H,            # two matmuls: 2*M*E*H each
        transcendentals=M * H,          # sigmoid
        bytes_accessed=(M * E * x_bytes          # x read once
                        + E * H * 2 + H * E * 2  # weights read once (resident)
                        + (H + E) * 4            # biases
                        + M * E * out_bytes),    # output written once
    )

    return pl.pallas_call(
        mlp_kernel,
        out_shape=jax.ShapeDtypeStruct((M, E), out_dtype),
        grid_spec=pltpu.PrefetchScalarGridSpec(
            num_scalar_prefetch=0,
            grid=(num_m_tiles,),
            in_specs=[
                pl.BlockSpec((tm, E), lambda i: (i, 0)),   # x row tile (streamed)
                pl.BlockSpec((E, H), lambda i: (0, 0)),    # W1, VMEM-resident
                pl.BlockSpec((1, H), lambda i: (0, 0)),    # b1, VMEM-resident
                pl.BlockSpec((H, E), lambda i: (0, 0)),    # W2, VMEM-resident
                pl.BlockSpec((1, E), lambda i: (0, 0)),    # b2, VMEM-resident
            ],
            out_specs=pl.BlockSpec((tm, E), lambda i: (i, 0)),
        ),
        compiler_params=pltpu.CompilerParams(
            dimension_semantics=("parallel",),
            vmem_limit_bytes=vmem_limit,
        ),
        cost_estimate=cost,
    )(x, w1, b1, w2, b2)


@jax.jit
def mlp_forward(x_bte, params):
    """x_bte: (B, T, E) like the PyTorch module; returns (B, T, E)."""
    B, T, E = x_bte.shape
    x2d = x_bte.reshape(B * T, E)
    y2d = mlp_pallas(x2d, params["w1"], params["b1"], params["w2"], params["b2"])
    return y2d.reshape(B, T, E)


def init_params(key, n_embed):
    """Deterministic init matching nn.Linear shapes (uniform +/- 1/sqrt(fan_in))."""
    H = 4 * n_embed
    k1, k2, k3, k4 = jax.random.split(key, 4)
    lim1 = 1.0 / (n_embed ** 0.5)
    lim2 = 1.0 / (H ** 0.5)
    # stored as (in, out): transpose of PyTorch's (out, in) weight
    w1 = jax.random.uniform(k1, (n_embed, H), jnp.float32, -lim1, lim1)
    b1 = jax.random.uniform(k2, (1, H), jnp.float32, -lim1, lim1)
    w2 = jax.random.uniform(k3, (H, n_embed), jnp.float32, -lim2, lim2)
    b2 = jax.random.uniform(k4, (1, n_embed), jnp.float32, -lim2, lim2)
    # Pre-convert weights to bf16 once at init (halves weight HBM traffic, removes
    # the per-call wrapper cast); biases stay f32 (added in f32 inside the kernel).
    return {"w1": w1.astype(jnp.bfloat16), "b1": b1,
            "w2": w2.astype(jnp.bfloat16), "b2": b2}


if __name__ == "__main__":
    # Small, config-consistent shapes: batch=2, seq=8, n_embed=32 (hidden=128)
    B, T, E = 2, 8, 32
    key = jax.random.PRNGKey(0)
    kx, kp = jax.random.split(key)
    x = jax.random.normal(kx, (B, T, E), jnp.float32)
    params = init_params(kp, E)

    y = mlp_forward(x, params)
    jax.block_until_ready(y)

    # Pure-JAX reference mirroring the kernel's bf16 matmul inputs / f32 accumulation.
    x2d = x.reshape(B * T, E).astype(jnp.bfloat16).astype(jnp.float32)
    w1 = params["w1"].astype(jnp.float32)
    w2 = params["w2"].astype(jnp.float32)
    h = x2d @ w1 + params["b1"]
    h = h * jax.nn.sigmoid(h)
    h = h.astype(jnp.bfloat16).astype(jnp.float32)
    y_ref = (h @ w2 + params["b2"]).reshape(B, T, E)

    assert y.shape == (B, T, E)
    assert jnp.allclose(y, y_ref, atol=2e-2, rtol=2e-2), "mismatch vs reference"

    print("KERNEL_OK")
</pallas_src>

<mosaic_0001>
module attributes {stable_mosaic.version = 11 : i64} {
  func.func @mlp_kernel(%arg0: i32, %arg1: memref<8x32xf32, #tpu.memory_space<vmem>>, %arg2: memref<32x128xbf16, #tpu.memory_space<vmem>>, %arg3: memref<1x128xf32, #tpu.memory_space<vmem>>, %arg4: memref<128x32xbf16, #tpu.memory_space<vmem>>, %arg5: memref<1x32xf32, #tpu.memory_space<vmem>>, %arg6: memref<8x32xf32, #tpu.memory_space<vmem>>) attributes {dimension_semantics = [#tpu.dimension_semantics<parallel>], iteration_bounds = array<i64: 2>, scalar_prefetch = 0 : i64, scratch_operands = 0 : i64, tpu.core_type = #tpu.core_type<tc>, window_params = [{transform_indices = @transform_0, window_bounds = array<i64: 8, 32>}, {pipeline_mode = #tpu.pipeline_mode<synchronous>, transform_indices = @transform_1, window_bounds = array<i64: 32, 128>}, {pipeline_mode = #tpu.pipeline_mode<synchronous>, transform_indices = @transform_2, window_bounds = array<i64: 1, 128>}, {pipeline_mode = #tpu.pipeline_mode<synchronous>, transform_indices = @transform_3, window_bounds = array<i64: 128, 32>}, {pipeline_mode = #tpu.pipeline_mode<synchronous>, transform_indices = @transform_4, window_bounds = array<i64: 1, 32>}, {transform_indices = @transform_5, window_bounds = array<i64: 8, 32>}]} {
    %c0 = arith.constant 0 : index
    %c0_0 = arith.constant 0 : index
    %0 = vector.load %arg1[%c0, %c0_0] : memref<8x32xf32, #tpu.memory_space<vmem>>, vector<8x32xf32>
    %1 = arith.truncf %0 : vector<8x32xf32> to vector<8x32xbf16>
    %c0_1 = arith.constant 0 : index
    %c0_2 = arith.constant 0 : index
    %2 = vector.load %arg2[%c0_1, %c0_2] : memref<32x128xbf16, #tpu.memory_space<vmem>>, vector<32x128xbf16>
    %cst = arith.constant dense<0.000000e+00> : vector<8x128xf32>
    %3 = tpu.matmul %1, %2, %cst {dimension_numbers = #tpu.dot_dimension_numbers<[1], [0], [0], [1], [0, 0, 1, 1], [], []>} : vector<8x32xbf16>, vector<32x128xbf16>, vector<8x128xf32> -> vector<8x128xf32>
    %c0_3 = arith.constant 0 : index
    %c0_4 = arith.constant 0 : index
    %4 = vector.load %arg3[%c0_3, %c0_4] : memref<1x128xf32, #tpu.memory_space<vmem>>, vector<1x128xf32>
    %5 = vector.broadcast %4 : vector<1x128xf32> to vector<8x128xf32>
    %6 = arith.addf %3, %5 : vector<8x128xf32>
    %7 = arith.negf %6 : vector<8x128xf32>
    %8 = math.exp %7 : vector<8x128xf32>
    %cst_5 = arith.constant 1.000000e+00 : f32
    %9 = vector.broadcast %cst_5 : f32 to vector<8x128xf32>
    %10 = arith.addf %9, %8 : vector<8x128xf32>
    %11 = arith.divf %9, %10 : vector<8x128xf32>
    %12 = arith.mulf %6, %11 : vector<8x128xf32>
    %13 = arith.truncf %12 : vector<8x128xf32> to vector<8x128xbf16>
    %c0_6 = arith.constant 0 : index
    %c0_7 = arith.constant 0 : index
    %14 = vector.load %arg4[%c0_6, %c0_7] : memref<128x32xbf16, #tpu.memory_space<vmem>>, vector<128x32xbf16>
    %cst_8 = arith.constant dense<0.000000e+00> : vector<8x32xf32>
    %15 = tpu.matmul %13, %14, %cst_8 {dimension_numbers = #tpu.dot_dimension_numbers<[1], [0], [0], [1], [0, 0, 1, 1], [], []>} : vector<8x128xbf16>, vector<128x32xbf16>, vector<8x32xf32> -> vector<8x32xf32>
    %c0_9 = arith.constant 0 : index
    %c0_10 = arith.constant 0 : index
    %16 = vector.load %arg5[%c0_9, %c0_10] : memref<1x32xf32, #tpu.memory_space<vmem>>, vector<1x32xf32>
    %17 = vector.broadcast %16 : vector<1x32xf32> to vector<8x32xf32>
    %18 = arith.addf %15, %17 : vector<8x32xf32>
    %c0_11 = arith.constant 0 : index
    %c0_12 = arith.constant 0 : index
    %19 = vector.load %arg6[%c0_11, %c0_12] : memref<8x32xf32, #tpu.memory_space<vmem>>, vector<8x32xf32>
    tpu.vector_store %arg6[%c0_11, %c0_12], %18 {strides = array<i32>} : memref<8x32xf32, #tpu.memory_space<vmem>>, vector<8x32xf32>,
    return
  }
  func.func @transform_0(%arg0: i32) -> (i32, i32) {
    %c0_i32 = arith.constant 0 : i32
    %c0_i32_0 = arith.constant 0 : i32
    return %arg0, %c0_i32 : i32, i32
  }
  func.func @transform_1(%arg0: i32) -> (i32, i32) {
    %c0_i32 = arith.constant 0 : i32
    %c0_i32_0 = arith.constant 0 : i32
    %c0_i32_1 = arith.constant 0 : i32
    return %c0_i32, %c0_i32_0 : i32, i32
  }
  func.func @transform_2(%arg0: i32) -> (i32, i32) {
    %c0_i32 = arith.constant 0 : i32
    %c0_i32_0 = arith.constant 0 : i32
    %c0_i32_1 = arith.constant 0 : i32
    return %c0_i32, %c0_i32_0 : i32, i32
  }
  func.func @transform_3(%arg0: i32) -> (i32, i32) {
    %c0_i32 = arith.constant 0 : i32
    %c0_i32_0 = arith.constant 0 : i32
    %c0_i32_1 = arith.constant 0 : i32
    return %c0_i32, %c0_i32_0 : i32, i32
  }
  func.func @transform_4(%arg0: i32) -> (i32, i32) {
    %c0_i32 = arith.constant 0 : i32
    %c0_i32_0 = arith.constant 0 : i32
    %c0_i32_1 = arith.constant 0 : i32
    return %c0_i32, %c0_i32_0 : i32, i32
  }
  func.func @transform_5(%arg0: i32) -> (i32, i32) {
    %c0_i32 = arith.constant 0 : i32
    %c0_i32_0 = arith.constant 0 : i32
    return %arg0, %c0_i32 : i32, i32
  }
}

</mosaic_0001>

<bundles_post_ra>
// kernel: mlp_forward.1
= control target key start
LH: loop header
LB: loop body
LE: loop exit
PB: predicated region body
PF: predicated region fallthrough
CT: control target
= control target key end

     0   :  { %10 = vsyncpa [#allocation3], 0  ;;  %s837_s0 = inlined_call_operand.vmem [shape: f32[16,32], index: 0, kind: input, shape index: {}]   ;;  %s838_s1 = inlined_call_operand.vmem [shape: bf16[32,128], index: 1, kind: input, shape index: {}]   ;;  %s839_s2 = inlined_call_operand.vmem [shape: f32[1,128], index: 2, kind: input, shape index: {}]   ;;  %s840_s3 = inlined_call_operand.vmem [shape: bf16[128,32], index: 3, kind: input, shape index: {}]   ;;  %s841_s4 = inlined_call_operand.vmem [shape: f32[1,32], index: 4, kind: input, shape index: {}]   ;;  %s842_s5 = inlined_call_operand.hbm [shape: f32[16,32], index: 5, kind: output, shape index: {}]  }
   0x1   :  { %12 = vsyncpa [#allocation3 + $0x1], 0  ;;  %s699_s18 = smov 0   ;;  %s701_s19 = smov 0  }
   0x2   :  { %s703_s20 = smov 0   ;;  %s705_s21 = smov 0  }
   0x3 LB: > { %s720_s22 = sadd.s32 4294967295, %s664_s21   ;;  %s483_s23 = sadd.s32 4294967294, %s664_s21   ;;  %s664_s21 = sphi %s705_s21, %s848_s21   ;;  %s660_s20 = sphi %s703_s20, %s847_s20   ;;  %s656_s19 = sphi %s701_s19, %s846_s19   ;;  %s652_s18 = sphi %s699_s18, %s845_s18  }
   0x4   : > { %s724_s24 = sadd.s32 1, %s664_s21   ;;  %s135_s25 = sadd.s32 1, %s660_s20 }
   0x5   : > { %s132_s26 = ssub.s32 %s664_s21, %s724_s24  ;;  %p145_p0 = scmp.ne.s32.totalorder %s660_s20, %s656_s19 }
   0x6   : > { %p133_p1 = scmp.eq.s32.totalorder %s132_s26, 0  ;;  %p146_p2 = scmp.eq.s32.totalorder %s720_s22, 1 }
   0x7   : > { %p151_p3 = scmp.ne.s32.totalorder %s656_s19, %s652_s18  ;;  %p152_p4 = scmp.eq.s32.totalorder %s483_s23, 1 }
   0x8   : > { %s735_s27 = scalar_select %p133_p1, %s660_s20, %s135_s25  }
   0x9   : > { %p737_p5 = por %p146_p2, %p145_p0  ;;  %p741_p6 = por %p152_p4, %p151_p3 }
   0xa   : > { %p486_p7 = scmp.ge.s32.totalorder %s664_s21, 1  ;;  %p189_p8 = scmp.lt.s32.totalorder %s664_s21, 3 }
   0xc   : > { %p190_p9 = pnand %p486_p7, %p189_p8 }
   0xd   : > { %v588_v0 = vld [vmem:[%s838_s1] sm:$0xff] (!%p190_p9)   ;;  %v666_v1 = vmov (!%p190_p9), 0.0   ;;  %v589_v2 = vld [vmem:[%s838_s1 + $0x8] sm:$0xff] (!%p190_p9)   ;;  %vm667_vm0 = vmmov (!%p190_p9), 0   ;;  %p216_p10 = scmp.lt.s32.totalorder (!%p190_p9), %s720_s22, 1  ;;  %vm246_vm1 = vcmask (!%p190_p9), 261120  }
   0xe   : > { %193 = sbr.rel (%p190_p9) target bundleno = 500 (0x1f4), region = 40  ;;  %519 = vmatprep.subr.bf16.mxu0 (!%p190_p9), %v666_v1  ;;  %527 = vmatprep.subr.bf16.mxu1 (!%p190_p9), %v666_v1  ;;  %v590_v5 = vld [vmem:[%s840_s3] sm:$0xff] (!%p190_p9)   ;;  %v591_v6 = vld [vmem:[%s840_s3 + $0x8] sm:$0xff] (!%p190_p9)   ;;  %v592_v7 = vld [vmem:[%s840_s3 + $0x10] sm:$0xff] (!%p190_p9)   ;;  %s213_s16 = sand.u32 (!%p190_p9), 1, %s656_s19  }
   0xf   : > { %520 = vmatpush3.bf16.msra.mxu0 (!%p190_p9), %v588_v0  ;;  %523 = vmatprep.mubr.msk.bf16.mxu0 (!%p190_p9), %vm667_vm0, %v666_v1  ;;  %v593_v8 = vld [vmem:[%s840_s3 + $0x18] sm:$0xff] (!%p190_p9)   ;;  %v594_v9 = vld [vmem:[%s840_s3 + $0x20] sm:$0xff] (!%p190_p9)   ;;  %v595_v10 = vld [vmem:[%s840_s3 + $0x28] sm:$0xff] (!%p190_p9)   ;;  %s487_s17 = sshll.u32 (!%p190_p9), %s213_s16, 3  ;;  %s504_s26 = sshll.u32 (!%p190_p9), %s720_s22, 7 }
  0x10   : > { %521 = vmatprep.subr.bf16.mxu0 (!%p190_p9), %v666_v1  ;;  %543 = vmatprep.mubr.msk.bf16.mxu1 (!%p190_p9), %vm667_vm0, %v666_v1  ;;  %v596_v11 = vld [vmem:[%s840_s3 + $0x30] sm:$0xff] (!%p190_p9)   ;;  %v597_v12 = vld [vmem:[%s840_s3 + $0x38] sm:$0xff] (!%p190_p9)   ;;  %v489_v13 = vld [vmem:[%s839_s2] ss:$0 sm:$0xff] (!%p190_p9)  ;;  %s215_s30 = scalar_lea.vmem (!%p190_p9), [#allocation2], %s487_s17  ;;  %s668_s11 = smov (!%p190_p9), [#allocation2]  }
  0x11   : > { %528 = vmatpush3.bf16.msra.mxu1 (!%p190_p9), %v590_v5  ;;  %v494_v25 = vld [vmem:[%s841_s4] ss:$0 sm:$0xff] (!%p190_p9)  ;;  %s424_s6 = sshll.u32 (!%p190_p9), %s215_s30, 4  ;;  %s606_s12 = sshll.u32 (!%p190_p9), %s668_s11, 4  ;;  %s796_s6 = int_to_ptr.vmem [resolvable:$true] %s424_s6  ;;  %s607_s12 = int_to_ptr.vmem [resolvable:$false] %s606_s12 }
  0x12   : > { %529 = vmatprep.subr.bf16.mxu1 (!%p190_p9), %v666_v1  ;;  %p609_p0 = scmp.lt.s32.totalorder (!%p190_p9), %s796_s6, %s607_s12 }
  0x13   : > { %522 = vmatpush3.bf16.msra.mxu0 (!%p190_p9), %v589_v2 }
  0x15   : > { %s217_s9 = scalar_select %p216_p10, %s720_s22, 1  ;;  %530 = vmatpush3.bf16.msra.mxu1 %v591_v6 }
  0x16   : > { %531 = vmatprep.subr.bf16.mxu1 %v666_v1  ;;  %s411_s22 = scalar_lea.sflag [#allocation3], %s213_s16 }
  0x17   : > { %s488_s10 = sshll.u32 %s217_s9, 3  ;;  %s794_s9 = scalar_lea.hbm %s842_s5, %s504_s26 }
  0x18   : > { %s219_s13 = scalar_lea.vmem %s837_s0, %s488_s10  ;;  %s602_s10 = scalar_lea.vmem %s796_s6, 128 }
  0x19   : > { %v221_v3 = vld [vmem:[%s219_s13] sm:$0xff]  ;;  %532 = vmatpush3.bf16.msra.mxu1 %v592_v7  ;;  %p603_p11 = scmp.ne.s32.totalorder %s796_s6, %s602_s10  ;;  %s608_s13 = scalar_lea.vmem %s607_s12, 256 }
  0x1a   : > { %v222_v4 = vpack.c.bf16 %v221_v3, %v221_v3  ;;  %533 = vmatprep.subr.bf16.mxu1 %v666_v1  ;;  %p610_p1 = scmp.lt.s32.totalorder %s608_s13, %s602_s10 }
  0x1b   : > { %p604_p12 = pnand %p603_p11, %p737_p5 }
  0x1c   : > { %524 = vmatmul.mubr.msk.bf16.vlgmr.msra.gmra.mrb[0].mxu0 %vm246_vm1, %v222_v4  ;;  %p611_p2 = por %p610_p1, %p609_p0 }
  0x1d   : > { %534 = vmatpush3.bf16.msra.mxu1 %v593_v8  ;;  %p605_p13 = pneg %p604_p12 }
  0x1e   : > { %535 = vmatprep.subr.bf16.mxu1 %v666_v1 }
  0x1f   : > { %p612_p3 = pnand %p611_p2, %p605_p13 }
  0x21   : > { %536 = vmatpush3.bf16.msra.mxu1 %v594_v9 }
  0x22   : > { %537 = vmatprep.subr.bf16.mxu1 %v666_v1 }
  0x25   : > { %538 = vmatpush3.bf16.msra.mxu1 %v595_v10 }
  0x26   : > { %539 = vmatprep.subr.bf16.mxu1 %v666_v1 }
  0x29   : > { %540 = vmatpush3.bf16.msra.mxu1 %v596_v11 }
  0x2a   : > { %541 = vmatprep.subr.bf16.mxu1 %v666_v1 }
  0x2d   : > { %542 = vmatpush3.bf16.msra.mxu1 %v597_v12 }
  0xef   : > { %v284_v14 = vpop.f32.mrb[0].mxu0 }
  0xf0   : > { %v285_v15 = vadd.f32 %v489_v13, %v284_v14  ;;  %v525_v16 = vpop.f32.mrb[1].mxu0 }
  0xf1   : > { %v287_v17 = vpop.f32.mrb[2].mxu0 }
  0xf2   : > { %v493_v18 = vmul.f32 -1.442695, %v285_v15  ;;  %v526_v19 = vpop.f32.mrb[3].mxu0 }
  0xf4   : > { %598 = vpow2.f32 %v493_v18 }
  0xfe   : > { %v599_v20 = vpop.eup %598 }
  0xff   : > { %v293_v21 = vadd.f32 1.0, %v599_v20 }
 0x101   : > { %600 = vrcp.f32 %v293_v21 }
 0x10b   : > { %v601_v22 = vpop.eup %600 }
 0x10c   : > { %v296_v23 = vmul.f32 %v601_v22, %v285_v15 }
 0x10e   : > { %v297_v24 = vpack.c.bf16 %v296_v23, %v296_v23 }
 0x110   : > { %544 = vmatmul.mubr.bf16.vlgmr.msra.gmra.mrb[0].mxu1 %v297_v24 }
 0x1e3   : > { %v403_v26 = vpop.f32.mrb[0].mxu1 }
 0x1e4   : > { %v404_v27 = vadd.f32 %v494_v25, %v403_v26  ;;  %v545_v28 = vpop.f32.mrb[1].mxu1 }
 0x1e5   : > { %v406_v29 = vpop.f32.mrb[2].mxu1 }
 0x1e6   : > { %v546_v30 = vpop.f32.mrb[3].mxu1  ;;  %409 = vst.msk [vmem:[%s215_s30] sm:$0xff] %vm246_vm1, %v404_v27 }
 0x1e7   : > { %615 = shalt.err (!%p612_p3)
}
 0x1e8   : > { %s616_s14 = scalar_lea.hbm %s794_s9, 128  ;;  %s620_s17 = scalar_lea.hbm %s842_s5, 256 }
 0x1e9   : > { %p617_p4 = scmp.ne.s32.totalorder %s794_s9, %s616_s14  ;;  %p621_p9 = scmp.lt.u32.totalorder %s794_s9, %s842_s5 }
 0x1ea   : > { %p622_p10 = scmp.lt.u32.totalorder %s620_s17, %s616_s14  ;;  %p624_p12 = scmp.lt.u32.totalorder %s616_s14, %s794_s9 }
 0x1eb   : > { %p618_p7 = pnand %p617_p4, %p737_p5 }
 0x1ec   : > { %p623_p11 = por %p622_p10, %p621_p9 }
 0x1ed   : > { %p619_p8 = pneg %p618_p7 }
 0x1ee   : > { %p625_p13 = por %p624_p12, %p623_p11 }
 0x1f0   : > { %p626_p0 = pnand %p625_p13, %p619_p8 }
 0x1f2   : > { %629 = shalt.err (!%p626_p0)
}
 0x1f3   : > { %547 = dma.vmem_to_hbm [thread:$0]  (%p737_p5), %s796_s6, 128, %s794_s9, %s411_s22  }
 0x1f4 PF: > { %p553_p1 = scmp.ge.s32.totalorder %s664_s21, 2  ;;  %s436_s26 = sand.u32 1, %s652_s18  }
 0x1f5   : > { %s437_s30 = scalar_lea.sflag [#allocation3], %s436_s26 }
 0x1f6   : > { %p550_p2 = pnand %p553_p1, %p741_p6 }
 0x1f8   : > { %647 = dma.done.wait (!%p550_p2), %s437_s30, 128  }
 0x1f9   : > { %649 = vsyncadd (!%p550_p2), %s437_s30, 4294967168  ;;  %p15_p3 = scmp.ge.s32.totalorder %s724_s24, 4   ;;  %s845_s18 = smov %s656_s19 }
 0x1fa   : > { %s846_s19 = smov %s660_s20  ;;  %s847_s20 = smov %s735_s27 }
 0x1fb   : > { %s848_s21 = smov %s724_s24  ;;  %17 = sbr.rel (!%p15_p3) target bundleno = 3 (0x3), region = 75 }
 0x202   :  { %442 = vsyncpa [#allocation3], 1 }
 0x203   :  { %444 = vsyncpa [#allocation3 + $0x1], 1 }

</bundles_post_ra>
